<compile_context>
chip_gen: v7x
topology: tpu7x:2x2x1
jax: 0.10.0
libtpu: 0.0.40
codegen_flags: <defaults>
</compile_context>

<pallas_src>
import jax
import jax.numpy as jnp
from jax.experimental import pallas as pl
from jax.experimental.pallas import tpu as pltpu

# Small shapes consistent with the module (original uses N_fine=50, mid=128).
N_FINE = 16          # spatial size H = W
MID = 32             # mid_channels
KSIZE = 3
PAD = 1
NTAPS = KSIZE * KSIZE
HW = N_FINE * N_FINE

# Flattened-lane shift for tap k:  dh = k//3 - 1, dw = k%3 - 1.
SHIFTS = tuple((k // KSIZE - PAD) * N_FINE + (k % KSIZE - PAD)
               for k in range(NTAPS))

# Max batch elements per grid step (f32 footprint ~8 MB per block at 64).
BT_MAX = 64


# ---------------------------------------------------------------------------
# Host-side helpers
# ---------------------------------------------------------------------------
def _valid_masks(bt):
    """(NTAPS, bt*HW) 0/1 masks: mask[k, b*HW + p] = 1 iff tap k of output
    pixel p lies inside the image (zero padding=1 handled exactly).  The mask
    also kills the lane-roll wrap-around across batch-element boundaries."""
    h = jnp.arange(N_FINE)[:, None]
    w = jnp.arange(N_FINE)[None, :]
    rows = []
    for k in range(NTAPS):
        dh, dw = k // KSIZE - PAD, k % KSIZE - PAD
        valid = ((h + dh >= 0) & (h + dh < N_FINE) &
                 (w + dw >= 0) & (w + dw < N_FINE)).reshape(-1)       # (HW,)
        rows.append(jnp.tile(valid, bt))                              # (bt*HW,)
    return jnp.stack(rows, axis=0).astype(jnp.float32)


def _pick_blocks(b):
    """Pick (num_blocks, block_size): >=2 blocks when b>1 (v7x: 2 TCs),
    balanced so padding waste is < one block, capped at BT_MAX."""
    if b <= 1:
        return 1, 1
    nb = max(2, pl.cdiv(b, BT_MAX))
    bt = pl.cdiv(b, nb)
    return nb, bt


# ---------------------------------------------------------------------------
# Kernel
# ---------------------------------------------------------------------------
def _shift_lanes(v, s, length):
    """out[..., p] = v[..., (p + s) % length]; wrap-around is masked by caller."""
    amt = (-s) % length
    if amt == 0:
        return v
    return pltpu.roll(v, shift=amt, axis=1)


def two_conv_kernel(x_ref, mask_ref, w1_ref, b1_ref, w2t_ref, b2_ref,
                    o_ref, rows_ref):
    """One batch block (bt elements, flattened to L = bt*HW lanes) per step.

    x_ref:    (1, 1, L)      raw input block, L on lanes
    mask_ref: (NTAPS, L)     0/1 boundary masks per tap
    w1_ref:   (MID, NTAPS)   conv1 weights, column k = tap k
    b1_ref:   (MID, 1)       conv1 bias
    w2t_ref:  (NTAPS, MID)   conv2 weights transposed, row k = tap k
    b2_ref:   (1, 1) SMEM    conv2 bias (scalar)
    o_ref:    (1, 1, L)      output block, lane-dense
    rows_ref: (NTAPS, L)     VMEM scratch, reused by both conv stages
    """
    L = x_ref.shape[-1]
    x = x_ref[0]                                                # (1, L)
    masks = mask_ref[...]                                       # (NTAPS, L)

    # ---- conv1 im2col in-kernel: 9 lane rolls (XLU) into the scratch ----
    for k, s in enumerate(SHIFTS):
        rows_ref[k:k + 1, :] = _shift_lanes(x, s, L)
    taps = rows_ref[...] * masks                                # (NTAPS, L)

    # ---- conv1 channel lift: ONE 2D MXU matmul, batch folded into N ----
    hid = jnp.dot(w1_ref[...], taps,
                  preferred_element_type=jnp.float32)           # (MID, L)
    hid = hid + b1_ref[...]

    # ---- conv2 channel contraction: ONE 2D MXU matmul ----
    g = jnp.dot(w2t_ref[...], hid,
                preferred_element_type=jnp.float32)             # (NTAPS, L)

    # ---- conv2 spatial taps: 9 lane rolls + masks + sublane reduction ----
    for k, s in enumerate(SHIFTS):
        rows_ref[k:k + 1, :] = _shift_lanes(g[k:k + 1, :], s, L)
    out = jnp.sum(rows_ref[...] * masks, axis=0, keepdims=True)  # (1, L)
    out = out + b2_ref[0, 0]

    o_ref[0] = out.astype(o_ref.dtype)


# ---------------------------------------------------------------------------
# Wrapper
# ---------------------------------------------------------------------------
def two_conv_forward(t, x_flat, params):
    """Matches TwoConvLayer.forward(t, x): (B, H*W) -> (B, H*W). `t` unused."""
    del t
    w1r, b1, w2t, b2 = params
    b, hw = x_flat.shape
    assert hw == HW

    nb, bt = _pick_blocks(b)
    bp = nb * bt
    L = bt * HW

    xp = x_flat.astype(jnp.float32)
    if bp != b:
        xp = jnp.pad(xp, ((0, bp - b), (0, 0)))
    xr = xp.reshape(nb, 1, L)                    # free, contiguous reshape

    masks = _valid_masks(bt)                     # (NTAPS, L)

    out = pl.pallas_call(
        two_conv_kernel,
        out_shape=jax.ShapeDtypeStruct((nb, 1, L), jnp.float32),
        grid_spec=pltpu.PrefetchScalarGridSpec(
            num_scalar_prefetch=0,
            grid=(nb,),
            in_specs=[
                pl.BlockSpec((1, 1, L), lambda i: (i, 0, 0)),          # x block
                pl.BlockSpec((NTAPS, L), lambda i: (0, 0)),            # masks
                pl.BlockSpec((MID, NTAPS), lambda i: (0, 0)),          # w1
                pl.BlockSpec((MID, 1), lambda i: (0, 0)),              # b1
                pl.BlockSpec((NTAPS, MID), lambda i: (0, 0)),          # w2^T
                pl.BlockSpec(memory_space=pltpu.MemorySpace.SMEM),     # b2
            ],
            out_specs=pl.BlockSpec((1, 1, L), lambda i: (i, 0, 0)),
            scratch_shapes=[pltpu.VMEM((NTAPS, L), jnp.float32)],
        ),
        compiler_params=pltpu.CompilerParams(
            dimension_semantics=("parallel",)),
    )(xr, masks, w1r, b1.reshape(MID, 1), w2t,
      b2.reshape(1, 1).astype(jnp.float32))

    return out.reshape(bp, HW)[:b]


# ---------------------------------------------------------------------------
# Reference + harness
# ---------------------------------------------------------------------------
def init_params(key):
    """Deterministic init matching PyTorch Conv2d shapes (OIHW), fan-in scale."""
    k1, k2, k3, k4 = jax.random.split(key, 4)
    bd1 = 1.0 / jnp.sqrt(jnp.float32(1 * KSIZE * KSIZE))
    bd2 = 1.0 / jnp.sqrt(jnp.float32(MID * KSIZE * KSIZE))
    w1 = jax.random.uniform(k1, (MID, 1, KSIZE, KSIZE), jnp.float32, -bd1, bd1)
    b1 = jax.random.uniform(k2, (MID,), jnp.float32, -bd1, bd1)
    w2 = jax.random.uniform(k3, (1, MID, KSIZE, KSIZE), jnp.float32, -bd2, bd2)
    b2 = jax.random.uniform(k4, (1,), jnp.float32, -bd2, bd2)
    return w1, b1, w2, b2


def ref_forward(x_flat, w1, b1, w2, b2):
    """Pure-JAX reference (lax conv), mirrors the PyTorch forward exactly."""
    bsz = x_flat.shape[0]
    x4 = x_flat.reshape(bsz, 1, N_FINE, N_FINE)
    h = jax.lax.conv_general_dilated(
        x4, w1, window_strides=(1, 1), padding=((PAD, PAD), (PAD, PAD)),
        dimension_numbers=('NCHW', 'OIHW', 'NCHW')) + b1[None, :, None, None]
    # NOTE: the PyTorch forward does NOT apply self.tanh between the convs.
    o = jax.lax.conv_general_dilated(
        h, w2, window_strides=(1, 1), padding=((PAD, PAD), (PAD, PAD)),
        dimension_numbers=('NCHW', 'OIHW', 'NCHW')) + b2[None, :, None, None]
    return o.reshape(bsz, HW)


if __name__ == "__main__":
    key = jax.random.PRNGKey(0)
    kx, kp = jax.random.split(key)
    B = 2
    x = jax.random.normal(kx, (B, HW), jnp.float32)
    w1, b1, w2, b2 = init_params(kp)

    # Repack conv weights (OIHW) into kernel layouts.
    w1r = w1.reshape(MID, NTAPS)                  # (MID, 9), column k = tap k
    w2t = jnp.transpose(w2.reshape(MID, NTAPS))   # (9, MID), row k = tap k
    params = (w1r, b1, w2t, b2)

    t = jnp.float32(0.0)   # unused, matches forward(t, x) signature
    out = jax.block_until_ready(two_conv_forward(t, x, params))
    assert out.shape == (B, HW)

    ref = ref_forward(x, w1, b1, w2, b2)
    max_err = float(jnp.max(jnp.abs(out - ref)))
    if max_err > 1e-3:
        raise AssertionError(f"Pallas kernel mismatch vs reference: {max_err}")
    print("KERNEL_OK")
</pallas_src>

<mosaic_0001>
module attributes {stable_mosaic.version = 11 : i64} {
  func.func @two_conv_kernel(%arg0: i32, %arg1: memref<1x1x256xf32, #tpu.memory_space<vmem>>, %arg2: memref<9x256xf32, #tpu.memory_space<vmem>>, %arg3: memref<32x9xf32, #tpu.memory_space<vmem>>, %arg4: memref<32x1xf32, #tpu.memory_space<vmem>>, %arg5: memref<9x32xf32, #tpu.memory_space<vmem>>, %arg6: memref<1x1xf32, #tpu.memory_space<smem>>, %arg7: memref<1x1x256xf32, #tpu.memory_space<vmem>>, %arg8: memref<9x256xf32, #tpu.memory_space<vmem>>) attributes {dimension_semantics = [#tpu.dimension_semantics<parallel>], iteration_bounds = array<i64: 2>, scalar_prefetch = 0 : i64, scratch_operands = 1 : i64, tpu.core_type = #tpu.core_type<tc>, window_params = [{transform_indices = @transform_0, window_bounds = array<i64: 1, 1, 256>}, {pipeline_mode = #tpu.pipeline_mode<synchronous>, transform_indices = @transform_1, window_bounds = array<i64: 9, 256>}, {pipeline_mode = #tpu.pipeline_mode<synchronous>, transform_indices = @transform_2, window_bounds = array<i64: 32, 9>}, {pipeline_mode = #tpu.pipeline_mode<synchronous>, transform_indices = @transform_3, window_bounds = array<i64: 32, 1>}, {pipeline_mode = #tpu.pipeline_mode<synchronous>, transform_indices = @transform_4, window_bounds = array<i64: 9, 32>}, {transform_indices = @transform_5, window_bounds = array<i64: 1, 1>}, {transform_indices = @transform_6, window_bounds = array<i64: 1, 1, 256>}]} {
    %c0 = arith.constant 0 : index
    %c0_0 = arith.constant 0 : index
    %c0_1 = arith.constant 0 : index
    %0 = vector.load %arg1[%c0, %c0_0, %c0_1] : memref<1x1x256xf32, #tpu.memory_space<vmem>>, vector<1x1x256xf32>
    %1 = vector.shape_cast %0 : vector<1x1x256xf32> to vector<1x256xf32>
    %c0_2 = arith.constant 0 : index
    %c0_3 = arith.constant 0 : index
    %2 = vector.load %arg2[%c0_2, %c0_3] : memref<9x256xf32, #tpu.memory_space<vmem>>, vector<9x256xf32>
    %c17_i32 = arith.constant 17 : i32
    %3 = tpu.dynamic_rotate %1 by %c17_i32 dim 1 : vector<1x256xf32>, i32 -> vector<1x256xf32>
    %c0_4 = arith.constant 0 : index
    %c0_5 = arith.constant 0 : index
    %4 = vector.load %arg8[%c0_4, %c0_5] : memref<9x256xf32, #tpu.memory_space<vmem>>, vector<1x256xf32>
    tpu.vector_store %arg8[%c0_4, %c0_5], %3 {strides = array<i32>} : memref<9x256xf32, #tpu.memory_space<vmem>>, vector<1x256xf32>,
    %c16_i32 = arith.constant 16 : i32
    %5 = tpu.dynamic_rotate %1 by %c16_i32 dim 1 : vector<1x256xf32>, i32 -> vector<1x256xf32>
    %c1 = arith.constant 1 : index
    %c0_6 = arith.constant 0 : index
    %6 = vector.load %arg8[%c1, %c0_6] : memref<9x256xf32, #tpu.memory_space<vmem>>, vector<1x256xf32>
    tpu.vector_store %arg8[%c1, %c0_6], %5 {strides = array<i32>} : memref<9x256xf32, #tpu.memory_space<vmem>>, vector<1x256xf32>,
    %c15_i32 = arith.constant 15 : i32
    %7 = tpu.dynamic_rotate %1 by %c15_i32 dim 1 : vector<1x256xf32>, i32 -> vector<1x256xf32>
    %c2 = arith.constant 2 : index
    %c0_7 = arith.constant 0 : index
    %8 = vector.load %arg8[%c2, %c0_7] : memref<9x256xf32, #tpu.memory_space<vmem>>, vector<1x256xf32>
    tpu.vector_store %arg8[%c2, %c0_7], %7 {strides = array<i32>} : memref<9x256xf32, #tpu.memory_space<vmem>>, vector<1x256xf32>,
    %c1_i32 = arith.constant 1 : i32
    %9 = tpu.dynamic_rotate %1 by %c1_i32 dim 1 : vector<1x256xf32>, i32 -> vector<1x256xf32>
    %c3 = arith.constant 3 : index
    %c0_8 = arith.constant 0 : index
    %10 = vector.load %arg8[%c3, %c0_8] : memref<9x256xf32, #tpu.memory_space<vmem>>, vector<1x256xf32>
    tpu.vector_store %arg8[%c3, %c0_8], %9 {strides = array<i32>} : memref<9x256xf32, #tpu.memory_space<vmem>>, vector<1x256xf32>,
    %c4 = arith.constant 4 : index
    %c0_9 = arith.constant 0 : index
    %11 = vector.load %arg8[%c4, %c0_9] : memref<9x256xf32, #tpu.memory_space<vmem>>, vector<1x256xf32>
    tpu.vector_store %arg8[%c4, %c0_9], %1 {strides = array<i32>} : memref<9x256xf32, #tpu.memory_space<vmem>>, vector<1x256xf32>,
    %c255_i32 = arith.constant 255 : i32
    %12 = tpu.dynamic_rotate %1 by %c255_i32 dim 1 : vector<1x256xf32>, i32 -> vector<1x256xf32>
    %c5 = arith.constant 5 : index
    %c0_10 = arith.constant 0 : index
    %13 = vector.load %arg8[%c5, %c0_10] : memref<9x256xf32, #tpu.memory_space<vmem>>, vector<1x256xf32>
    tpu.vector_store %arg8[%c5, %c0_10], %12 {strides = array<i32>} : memref<9x256xf32, #tpu.memory_space<vmem>>, vector<1x256xf32>,
    %c241_i32 = arith.constant 241 : i32
    %14 = tpu.dynamic_rotate %1 by %c241_i32 dim 1 : vector<1x256xf32>, i32 -> vector<1x256xf32>
    %c6 = arith.constant 6 : index
    %c0_11 = arith.constant 0 : index
    %15 = vector.load %arg8[%c6, %c0_11] : memref<9x256xf32, #tpu.memory_space<vmem>>, vector<1x256xf32>
    tpu.vector_store %arg8[%c6, %c0_11], %14 {strides = array<i32>} : memref<9x256xf32, #tpu.memory_space<vmem>>, vector<1x256xf32>,
    %c240_i32 = arith.constant 240 : i32
    %16 = tpu.dynamic_rotate %1 by %c240_i32 dim 1 : vector<1x256xf32>, i32 -> vector<1x256xf32>
    %c7 = arith.constant 7 : index
    %c0_12 = arith.constant 0 : index
    %17 = vector.load %arg8[%c7, %c0_12] : memref<9x256xf32, #tpu.memory_space<vmem>>, vector<1x256xf32>
    tpu.vector_store %arg8[%c7, %c0_12], %16 {strides = array<i32>} : memref<9x256xf32, #tpu.memory_space<vmem>>, vector<1x256xf32>,
    %c239_i32 = arith.constant 239 : i32
    %18 = tpu.dynamic_rotate %1 by %c239_i32 dim 1 : vector<1x256xf32>, i32 -> vector<1x256xf32>
    %c8 = arith.constant 8 : index
    %c0_13 = arith.constant 0 : index
    %19 = vector.load %arg8[%c8, %c0_13] : memref<9x256xf32, #tpu.memory_space<vmem>>, vector<1x256xf32>
    tpu.vector_store %arg8[%c8, %c0_13], %18 {strides = array<i32>} : memref<9x256xf32, #tpu.memory_space<vmem>>, vector<1x256xf32>,
    %c0_14 = arith.constant 0 : index
    %c0_15 = arith.constant 0 : index
    %20 = vector.load %arg8[%c0_14, %c0_15] : memref<9x256xf32, #tpu.memory_space<vmem>>, vector<9x256xf32>
    %21 = arith.mulf %20, %2 : vector<9x256xf32>
    %c0_16 = arith.constant 0 : index
    %c0_17 = arith.constant 0 : index
    %22 = vector.load %arg3[%c0_16, %c0_17] : memref<32x9xf32, #tpu.memory_space<vmem>>, vector<32x9xf32>
    %cst = arith.constant dense<0.000000e+00> : vector<32x256xf32>
    %23 = tpu.matmul %22, %21, %cst {dimension_numbers = #tpu.dot_dimension_numbers<[1], [0], [0], [1], [0, 0, 1, 1], [], []>} : vector<32x9xf32>, vector<9x256xf32>, vector<32x256xf32> -> vector<32x256xf32>
    %c0_18 = arith.constant 0 : index
    %c0_19 = arith.constant 0 : index
    %24 = vector.load %arg4[%c0_18, %c0_19] : memref<32x1xf32, #tpu.memory_space<vmem>>, vector<32x1xf32>
    %25 = vector.broadcast %24 : vector<32x1xf32> to vector<32x256xf32>
    %26 = arith.addf %23, %25 : vector<32x256xf32>
    %c0_20 = arith.constant 0 : index
    %c0_21 = arith.constant 0 : index
    %27 = vector.load %arg5[%c0_20, %c0_21] : memref<9x32xf32, #tpu.memory_space<vmem>>, vector<9x32xf32>
    %cst_22 = arith.constant dense<0.000000e+00> : vector<9x256xf32>
    %28 = tpu.matmul %27, %26, %cst_22 {dimension_numbers = #tpu.dot_dimension_numbers<[1], [0], [0], [1], [0, 0, 1, 1], [], []>} : vector<9x32xf32>, vector<32x256xf32>, vector<9x256xf32> -> vector<9x256xf32>
    %29 = vector.extract_strided_slice %28 {offsets = [0, 0], sizes = [1, 256], strides = [1, 1]} : vector<9x256xf32> to vector<1x256xf32>
    %c17_i32_23 = arith.constant 17 : i32
    %30 = tpu.dynamic_rotate %29 by %c17_i32_23 dim 1 : vector<1x256xf32>, i32 -> vector<1x256xf32>
    %c0_24 = arith.constant 0 : index
    %c0_25 = arith.constant 0 : index
    %31 = vector.load %arg8[%c0_24, %c0_25] : memref<9x256xf32, #tpu.memory_space<vmem>>, vector<1x256xf32>
    tpu.vector_store %arg8[%c0_24, %c0_25], %30 {strides = array<i32>} : memref<9x256xf32, #tpu.memory_space<vmem>>, vector<1x256xf32>,
    %32 = vector.extract_strided_slice %28 {offsets = [1, 0], sizes = [1, 256], strides = [1, 1]} : vector<9x256xf32> to vector<1x256xf32>
    %c16_i32_26 = arith.constant 16 : i32
    %33 = tpu.dynamic_rotate %32 by %c16_i32_26 dim 1 : vector<1x256xf32>, i32 -> vector<1x256xf32>
    %c1_27 = arith.constant 1 : index
    %c0_28 = arith.constant 0 : index
    %34 = vector.load %arg8[%c1_27, %c0_28] : memref<9x256xf32, #tpu.memory_space<vmem>>, vector<1x256xf32>
    tpu.vector_store %arg8[%c1_27, %c0_28], %33 {strides = array<i32>} : memref<9x256xf32, #tpu.memory_space<vmem>>, vector<1x256xf32>,
    %35 = vector.extract_strided_slice %28 {offsets = [2, 0], sizes = [1, 256], strides = [1, 1]} : vector<9x256xf32> to vector<1x256xf32>
    %c15_i32_29 = arith.constant 15 : i32
    %36 = tpu.dynamic_rotate %35 by %c15_i32_29 dim 1 : vector<1x256xf32>, i32 -> vector<1x256xf32>
    %c2_30 = arith.constant 2 : index
    %c0_31 = arith.constant 0 : index
    %37 = vector.load %arg8[%c2_30, %c0_31] : memref<9x256xf32, #tpu.memory_space<vmem>>, vector<1x256xf32>
    tpu.vector_store %arg8[%c2_30, %c0_31], %36 {strides = array<i32>} : memref<9x256xf32, #tpu.memory_space<vmem>>, vector<1x256xf32>,
    %38 = vector.extract_strided_slice %28 {offsets = [3, 0], sizes = [1, 256], strides = [1, 1]} : vector<9x256xf32> to vector<1x256xf32>
    %c1_i32_32 = arith.constant 1 : i32
    %39 = tpu.dynamic_rotate %38 by %c1_i32_32 dim 1 : vector<1x256xf32>, i32 -> vector<1x256xf32>
    %c3_33 = arith.constant 3 : index
    %c0_34 = arith.constant 0 : index
    %40 = vector.load %arg8[%c3_33, %c0_34] : memref<9x256xf32, #tpu.memory_space<vmem>>, vector<1x256xf32>
    tpu.vector_store %arg8[%c3_33, %c0_34], %39 {strides = array<i32>} : memref<9x256xf32, #tpu.memory_space<vmem>>, vector<1x256xf32>,
    %41 = vector.extract_strided_slice %28 {offsets = [4, 0], sizes = [1, 256], strides = [1, 1]} : vector<9x256xf32> to vector<1x256xf32>
    %c4_35 = arith.constant 4 : index
    %c0_36 = arith.constant 0 : index
    %42 = vector.load %arg8[%c4_35, %c0_36] : memref<9x256xf32, #tpu.memory_space<vmem>>, vector<1x256xf32>
    tpu.vector_store %arg8[%c4_35, %c0_36], %41 {strides = array<i32>} : memref<9x256xf32, #tpu.memory_space<vmem>>, vector<1x256xf32>,
    %43 = vector.extract_strided_slice %28 {offsets = [5, 0], sizes = [1, 256], strides = [1, 1]} : vector<9x256xf32> to vector<1x256xf32>
    %c255_i32_37 = arith.constant 255 : i32
    %44 = tpu.dynamic_rotate %43 by %c255_i32_37 dim 1 : vector<1x256xf32>, i32 -> vector<1x256xf32>
    %c5_38 = arith.constant 5 : index
    %c0_39 = arith.constant 0 : index
    %45 = vector.load %arg8[%c5_38, %c0_39] : memref<9x256xf32, #tpu.memory_space<vmem>>, vector<1x256xf32>
    tpu.vector_store %arg8[%c5_38, %c0_39], %44 {strides = array<i32>} : memref<9x256xf32, #tpu.memory_space<vmem>>, vector<1x256xf32>,
    %46 = vector.extract_strided_slice %28 {offsets = [6, 0], sizes = [1, 256], strides = [1, 1]} : vector<9x256xf32> to vector<1x256xf32>
    %c241_i32_40 = arith.constant 241 : i32
    %47 = tpu.dynamic_rotate %46 by %c241_i32_40 dim 1 : vector<1x256xf32>, i32 -> vector<1x256xf32>
    %c6_41 = arith.constant 6 : index
    %c0_42 = arith.constant 0 : index
    %48 = vector.load %arg8[%c6_41, %c0_42] : memref<9x256xf32, #tpu.memory_space<vmem>>, vector<1x256xf32>
    tpu.vector_store %arg8[%c6_41, %c0_42], %47 {strides = array<i32>} : memref<9x256xf32, #tpu.memory_space<vmem>>, vector<1x256xf32>,
    %49 = vector.extract_strided_slice %28 {offsets = [7, 0], sizes = [1, 256], strides = [1, 1]} : vector<9x256xf32> to vector<1x256xf32>
    %c240_i32_43 = arith.constant 240 : i32
    %50 = tpu.dynamic_rotate %49 by %c240_i32_43 dim 1 : vector<1x256xf32>, i32 -> vector<1x256xf32>
    %c7_44 = arith.constant 7 : index
    %c0_45 = arith.constant 0 : index
    %51 = vector.load %arg8[%c7_44, %c0_45] : memref<9x256xf32, #tpu.memory_space<vmem>>, vector<1x256xf32>
    tpu.vector_store %arg8[%c7_44, %c0_45], %50 {strides = array<i32>} : memref<9x256xf32, #tpu.memory_space<vmem>>, vector<1x256xf32>,
    %52 = vector.extract_strided_slice %28 {offsets = [8, 0], sizes = [1, 256], strides = [1, 1]} : vector<9x256xf32> to vector<1x256xf32>
    %c239_i32_46 = arith.constant 239 : i32
    %53 = tpu.dynamic_rotate %52 by %c239_i32_46 dim 1 : vector<1x256xf32>, i32 -> vector<1x256xf32>
    %c8_47 = arith.constant 8 : index
    %c0_48 = arith.constant 0 : index
    %54 = vector.load %arg8[%c8_47, %c0_48] : memref<9x256xf32, #tpu.memory_space<vmem>>, vector<1x256xf32>
    tpu.vector_store %arg8[%c8_47, %c0_48], %53 {strides = array<i32>} : memref<9x256xf32, #tpu.memory_space<vmem>>, vector<1x256xf32>,
    %c0_49 = arith.constant 0 : index
    %c0_50 = arith.constant 0 : index
    %55 = vector.load %arg8[%c0_49, %c0_50] : memref<9x256xf32, #tpu.memory_space<vmem>>, vector<9x256xf32>
    %56 = arith.mulf %55, %2 : vector<9x256xf32>
    %cst_51 = arith.constant dense<0.000000e+00> : vector<256xf32>
    %57 = vector.multi_reduction <add>, %56, %cst_51 [0] : vector<9x256xf32> to vector<256xf32>
    %58 = vector.shape_cast %57 : vector<256xf32> to vector<1x256xf32>
    %c0_52 = arith.constant 0 : index
    %c0_53 = arith.constant 0 : index
    %59 = memref.load %arg6[%c0_52, %c0_53] : memref<1x1xf32, #tpu.memory_space<smem>>
    %60 = vector.broadcast %59 : f32 to vector<1x256xf32>
    %61 = arith.addf %58, %60 : vector<1x256xf32>
    %c0_54 = arith.constant 0 : index
    %c0_55 = arith.constant 0 : index
    %c0_56 = arith.constant 0 : index
    %62 = vector.load %arg7[%c0_54, %c0_55, %c0_56] : memref<1x1x256xf32, #tpu.memory_space<vmem>>, vector<1x1x256xf32>
    %63 = vector.shape_cast %62 : vector<1x1x256xf32> to vector<1x256xf32>
    %64 = vector.shape_cast %61 : vector<1x256xf32> to vector<1x1x256xf32>
    tpu.vector_store %arg7[%c0_54, %c0_55, %c0_56], %64 {strides = array<i32>} : memref<1x1x256xf32, #tpu.memory_space<vmem>>, vector<1x1x256xf32>,
    return
  }
  func.func @transform_0(%arg0: i32) -> (i32, i32, i32) {
    %c0_i32 = arith.constant 0 : i32
    %c0_i32_0 = arith.constant 0 : i32
    %c0_i32_1 = arith.constant 0 : i32
    return %arg0, %c0_i32, %c0_i32_0 : i32, i32, i32
  }
  func.func @transform_1(%arg0: i32) -> (i32, i32) {
    %c0_i32 = arith.constant 0 : i32
    %c0_i32_0 = arith.constant 0 : i32
    %c0_i32_1 = arith.constant 0 : i32
    return %c0_i32, %c0_i32_0 : i32, i32
  }
  func.func @transform_2(%arg0: i32) -> (i32, i32) {
    %c0_i32 = arith.constant 0 : i32
    %c0_i32_0 = arith.constant 0 : i32
    %c0_i32_1 = arith.constant 0 : i32
    return %c0_i32, %c0_i32_0 : i32, i32
  }
  func.func @transform_3(%arg0: i32) -> (i32, i32) {
    %c0_i32 = arith.constant 0 : i32
    %c0_i32_0 = arith.constant 0 : i32
    %c0_i32_1 = arith.constant 0 : i32
    return %c0_i32, %c0_i32_0 : i32, i32
  }
  func.func @transform_4(%arg0: i32) -> (i32, i32) {
    %c0_i32 = arith.constant 0 : i32
    %c0_i32_0 = arith.constant 0 : i32
    %c0_i32_1 = arith.constant 0 : i32
    return %c0_i32, %c0_i32_0 : i32, i32
  }
  func.func @transform_5(%arg0: i32) -> (i32, i32) {
    %c0_i32 = arith.constant 0 : i32
    %c0_i32_0 = arith.constant 0 : i32
    %c0_i32_1 = arith.constant 0 : i32
    return %c0_i32, %c0_i32_0 : i32, i32
  }
  func.func @transform_6(%arg0: i32) -> (i32, i32, i32) {
    %c0_i32 = arith.constant 0 : i32
    %c0_i32_0 = arith.constant 0 : i32
    %c0_i32_1 = arith.constant 0 : i32
    return %arg0, %c0_i32, %c0_i32_0 : i32, i32, i32
  }
}

</mosaic_0001>

<bundles_post_ra>
// kernel: tpu_custom_call.1
= control target key start
LH: loop header
LB: loop body
LE: loop exit
PB: predicated region body
PF: predicated region fallthrough
CT: control target
= control target key end

     0   :  { %s1655_s0 = inlined_call_operand.vmem [shape: f32[2,1,256], index: 0, kind: input, shape index: {}]   ;;  %s1656_s1 = inlined_call_operand.vmem [shape: f32[9,256], index: 1, kind: input, shape index: {}]   ;;  %s1657_s2 = inlined_call_operand.vmem [shape: f32[32,9], index: 2, kind: input, shape index: {}]   ;;  %s1658_s3 = inlined_call_operand.vmem [shape: f32[32,1], index: 3, kind: input, shape index: {}]   ;;  %s1659_s4 = inlined_call_operand.vmem [shape: f32[9,32], index: 4, kind: input, shape index: {}]   ;;  %s1660_s5 = inlined_call_operand.<no memory space> [shape: f32[1,1], index: 5, kind: input, shape index: {}]   ;;  %s1661_s6 = inlined_call_operand.hbm [shape: f32[2,1,256], index: 6, kind: output, shape index: {}]  }
   0x1   :  { %11 = sst [smem:[#allocation3]] %s1660_s5 }
   0x2   :  { %12 = vsyncpa [#allocation5], 0 }
   0x3   :  { %14 = vsyncpa [#allocation5 + $0x1], 0  ;;  %s1302_s23 = smov 0   ;;  %s1304_s24 = smov 0  }
   0x4   :  { %s1306_s25 = smov 0   ;;  %s1308_s26 = smov 0  }
   0x5 LB: > { %s1323_s5 = sadd.s32 4294967295, %s1249_s26   ;;  %s1100_s27 = sadd.s32 4294967294, %s1249_s26   ;;  %s1249_s26 = sphi %s1308_s26, %s1669_s26   ;;  %s1245_s25 = sphi %s1306_s25, %s1668_s25   ;;  %s1241_s24 = sphi %s1304_s24, %s1667_s24   ;;  %s1237_s23 = sphi %s1302_s23, %s1666_s23  }
   0x6   : > { %s1327_s28 = sadd.s32 1, %s1249_s26   ;;  %s158_s29 = sadd.s32 1, %s1245_s25 }
   0x7   : > { %s155_s30 = ssub.s32 %s1249_s26, %s1327_s28  ;;  %p168_p0 = scmp.ne.s32.totalorder %s1245_s25, %s1241_s24 }
   0x8   : > { %p156_p1 = scmp.eq.s32.totalorder %s155_s30, 0  ;;  %p169_p2 = scmp.eq.s32.totalorder %s1323_s5, 1 }
   0x9   : > { %p174_p3 = scmp.ne.s32.totalorder %s1241_s24, %s1237_s23  ;;  %p175_p4 = scmp.eq.s32.totalorder %s1100_s27, 1 }
   0xa   : > { %s1338_s7 = scalar_select %p156_p1, %s1245_s25, %s158_s29  }
   0xb   : > { %p1340_p5 = por %p169_p2, %p168_p0  ;;  %p1344_p6 = por %p175_p4, %p174_p3 }
   0xc   : > { %p1103_p7 = scmp.ge.s32.totalorder %s1249_s26, 1  ;;  %p215_p8 = scmp.lt.s32.totalorder %s1249_s26, 3 }
   0xe   : > { %p216_p9 = pnand %p1103_p7, %p215_p8 }
   0xf   : > { %p244_p10 = scmp.lt.s32.totalorder (!%p216_p9), %s1323_s5, 1  ;;  %v254_v0 = vlaneseq (!%p216_p9)  ;;  %s1251_s15 = smov (!%p216_p9), 16   ;;  %v1259_v8 = vmov (!%p216_p9), 0.0   ;;  %v508_v9 = vld [vmem:[%s1658_s3] sm:$0xff] (!%p216_p9)  ;;  %v509_v10 = vld [vmem:[%s1658_s3 + $0x8] sm:$0xff] (!%p216_p9)  ;;  %v1260_v11 = vmov (!%p216_p9), 0  }
  0x10   : > { %219 = sbr.rel (%p216_p9) target bundleno = 838 (0x346), region = 44  ;;  %s1252_s16 = smov (!%p216_p9), 17   ;;  %616 = vmatprep.mubr.f32.mxu0 (!%p216_p9), %v1259_v8  ;;  %714 = vmatprep.mubr.f32.mxu1 (!%p216_p9), %v1259_v8  ;;  %v510_v12 = vld [vmem:[%s1658_s3 + $0x10] sm:$0xff] (!%p216_p9)  ;;  %v511_v13 = vld [vmem:[%s1658_s3 + $0x18] sm:$0xff] (!%p216_p9)  ;;  %v1261_v14 = vmov (!%p216_p9), 1966171168  }
  0x11   : > { %v255_v1 = vshrl.u32 (!%p216_p9), %v254_v0, 7  ;;  %vm1355_vm0 = vcmp.lt.s32.totalorder (!%p216_p9), %v254_v0, 256  ;;  %s1253_s17 = smov (!%p216_p9), 15   ;;  %s1254_s18 = smov (!%p216_p9), 1   ;;  %1185 = vset.pattern.permute.xlu0 (!%p216_p9), %v1260_v11  ;;  %1186 = vset.pattern.permute.xlu1 (!%p216_p9), %v1260_v11  ;;  %v277_v15 = vunpack.c.l.s4 (!%p216_p9), %v1261_v14  ;;  %v1391_v16 = vand.u32 (!%p216_p9), 127, %v254_v0 }
  0x12   : > { %s1255_s19 = smov (!%p216_p9), 127   ;;  %s1256_s20 = smov (!%p216_p9), 113   ;;  %v1475_v14 = vld [vmem:[%s1656_s1 + $0x18] sm:$0x1] (!%p216_p9)  ;;  %vm545_vm9 = vcmask (!%p216_p9), 1040384   ;;  %vm1262_vm10 = vmmov (!%p216_p9), 1  }
  0x13   : > { %v256_v2 = vsub.s32 (!%p216_p9), 0, %v255_v1  ;;  %v260_v3 = vsub.s32 (!%p216_p9), 1, %v255_v1  ;;  %s1257_s21 = smov (!%p216_p9), 112   ;;  %s1258_s22 = smov (!%p216_p9), 111   ;;  %v278_v17 = vunpack.c.0.s8 (!%p216_p9), %v277_v15  ;;  %vm301_vm1 = vcmp.lt.s32.totalorder (!%p216_p9), %v1391_v16, 16  ;;  %v1480_v15 = vld [vmem:[%s1656_s1] sm:$0xff] (!%p216_p9)  ;;  %vm1121_vm11 = vmpackc.low (!%p216_p9), %vm545_vm9, %vm1262_vm10 }
  0x14   : > { %vm270_vm2 = vcmp.lt.s32.totalorder (!%p216_p9), %v1391_v16, 17  ;;  %vm329_vm3 = vcmp.lt.s32.totalorder (!%p216_p9), %v1391_v16, 15  ;;  %vm357_vm4 = vcmp.lt.s32.totalorder (!%p216_p9), %v1391_v16, 1  ;;  %vm388_vm5 = vcmp.lt.s32.totalorder (!%p216_p9), %v1391_v16, 127  ;;  %s1263_s13 = smov (!%p216_p9), [#allocation4]  }
  0x15   : > { %v1395_v20 = vsub.s32 (!%p216_p9), %v278_v17, %v255_v1  ;;  %vm416_vm6 = vcmp.lt.s32.totalorder (!%p216_p9), %v1391_v16, 113  ;;  %vm444_vm7 = vcmp.lt.s32.totalorder (!%p216_p9), %v1391_v16, 112  ;;  %vm472_vm8 = vcmp.lt.s32.totalorder (!%p216_p9), %v1391_v16, 111 }
  0x16   : > { %vm532_vm12 = vcmask (!%p216_p9), 72704   ;;  %vm643_vm13 = vcmask (!%p216_p9), 261120  }
  0x17   : > { %s245_s10 = scalar_select %p244_p10, %s1323_s5, 1 }
  0x19   : > { %s1105_s11 = sshll.u32 %s245_s10, 1 }
  0x1a   : > { %s247_s14 = scalar_lea.vmem %s1655_s0, %s1105_s11 }
  0x1b   : > { %v248_v4 = vld [vmem:[%s247_s14] sm:$0x3]  ;;  %s1191_s14 = sshll.u32 %s1263_s13, 4  ;;  %s1192_s14 = int_to_ptr.vmem [resolvable:$false] %s1191_s14 }
  0x1c   : > { %v257_v6 = vrot.slane %v248_v4, %v256_v2  ;;  %382 = vst.msk [vmem:[#allocation2 + $0x4] ss:$8 sm:$0x3] %vm1355_vm0, %v248_v4  ;;  %v261_v7 = vrot.slane %v248_v4, %v260_v3  ;;  %s1193_s27 = scalar_lea.vmem %s1192_s14, 64 }
  0x1e   : > { %297 = vrot.lane.b32.xlu1 %v257_v6, %s1251_s15  ;;  %264 = vrot.lane.b32.xlu0 %v257_v6, %s1252_s16 }
  0x22   : > { %299 = vrot.lane.b32.xlu1 %v261_v7, %s1251_s15  ;;  %266 = vrot.lane.b32.xlu0 %v261_v7, %s1252_s16 }
  0x26   : > { %327 = vrot.lane.b32.xlu1 %v261_v7, %s1253_s17  ;;  %325 = vrot.lane.b32.xlu0 %v257_v6, %s1253_s17 }
  0x2a   : > { %355 = vrot.lane.b32.xlu1 %v261_v7, %s1254_s18  ;;  %353 = vrot.lane.b32.xlu0 %v257_v6, %s1254_s18 }
  0x2e   : > { %386 = vrot.lane.b32.xlu1 %v261_v7, %s1255_s19  ;;  %384 = vrot.lane.b32.xlu0 %v257_v6, %s1255_s19 }
  0x32   : > { %414 = vrot.lane.b32.xlu1 %v261_v7, %s1256_s20  ;;  %412 = vrot.lane.b32.xlu0 %v257_v6, %s1256_s20 }
  0x36   : > { %442 = vrot.lane.b32.xlu1 %v261_v7, %s1257_s21  ;;  %440 = vrot.lane.b32.xlu0 %v257_v6, %s1257_s21 }
  0x3a   : > { %470 = vrot.lane.b32.xlu1 %v261_v7, %s1258_s22  ;;  %468 = vrot.lane.b32.xlu0 %v257_v6, %s1258_s22 }
  0x3e   : > { %514 = vperm.xlu0 %1185, %v508_v9   ;;  %519 = vperm.xlu1 %1186, %v509_v10  }
  0x42   : > { %524 = vperm.xlu1 %1186, %v510_v12   ;;  %529 = vperm.xlu0 %1185, %v511_v13   ;;  %v1470_v13 = vld [vmem:[%s1656_s1 + $0x8] sm:$0xff] }
  0x90   : > { %v298_v18 = vpop.permute.xlu1 %297  ;;  %v265_v19 = vpop.permute.xlu0 %264 }
  0x94   : > { %v300_v21 = vpop.permute.xlu1 %299  ;;  %v267_v22 = vpop.permute.xlu0 %266 }
  0x95   : > { %v302_v23 = vsel %vm301_vm1, %v298_v18, %v300_v21  ;;  %v303_v24 = vsel %vm301_vm1, %v300_v21, %v298_v18  ;;  %v271_v25 = vsel %vm270_vm2, %v265_v19, %v267_v22  ;;  %v272_v26 = vsel %vm270_vm2, %v267_v22, %v265_v19  ;;  %v1485_v18 = vld [vmem:[%s1656_s1 + $0x10] sm:$0x1] }
  0x96   : > { %v306_v27 = vcombine.low %v303_v24, %v302_v23  ;;  %v275_v28 = vcombine.low %v272_v26, %v271_v25 }
  0x98   : > { %v313_v29 = vrot.slane %v306_v27, %v1395_v20  ;;  %v282_v30 = vrot.slane %v275_v28, %v1395_v20  ;;  %v328_v31 = vpop.permute.xlu1 %327  ;;  %v326_v32 = vpop.permute.xlu0 %325 }
  0x99   : > { %v330_v33 = vsel %vm329_vm3, %v326_v32, %v328_v31  ;;  %v331_v34 = vsel %vm329_vm3, %v328_v31, %v326_v32  ;;  %v506_v31 = vld [vmem:[%s1657_s2 + $0x10] sm:$0xff]  ;;  %v507_v32 = vld [vmem:[%s1657_s2 + $0x18] sm:$0xff] }
  0x9a   : > { %v320_v35 = vrot.slane %v313_v29, %v1395_v20  ;;  %v289_v36 = vrot.slane %v282_v30, %v1395_v20  ;;  %v334_v37 = vcombine.low %v331_v34, %v330_v33  ;;  %v504_v29 = vld [vmem:[%s1657_s2] sm:$0xff]  ;;  %v505_v30 = vld [vmem:[%s1657_s2 + $0x8] sm:$0xff] }
  0x9c   : > { %323 = vst.msk [vmem:[#allocation2 + $0x1] ss:$8 sm:$0x3] %vm1355_vm0, %v320_v35  ;;  %295 = vst.msk [vmem:[#allocation2] ss:$8 sm:$0x3] %vm1355_vm0, %v289_v36  ;;  %v341_v38 = vrot.slane %v334_v37, %v1395_v20  ;;  %v356_v39 = vpop.permute.xlu1 %355  ;;  %v354_v40 = vpop.permute.xlu0 %353 }
  0x9d   : > { %v358_v41 = vsel %vm357_vm4, %v354_v40, %v356_v39  ;;  %v359_v42 = vsel %vm357_vm4, %v356_v39, %v354_v40 }
  0x9e   : > { %v348_v43 = vrot.slane %v341_v38, %v1395_v20  ;;  %v362_v44 = vcombine.low %v359_v42, %v358_v41 }
  0xa0   : > { %351 = vst.msk [vmem:[#allocation2 + $0x2] ss:$8 sm:$0x3] %vm1355_vm0, %v348_v43  ;;  %v369_v45 = vrot.slane %v362_v44, %v1395_v20  ;;  %v387_v46 = vpop.permute.xlu1 %386  ;;  %v385_v47 = vpop.permute.xlu0 %384 }
  0xa1   : > { %v389_v48 = vsel %vm388_vm5, %v385_v47, %v387_v46  ;;  %v390_v49 = vsel %vm388_vm5, %v387_v46, %v385_v47 }
  0xa2   : > { %v376_v50 = vrot.slane %v369_v45, %v1395_v20  ;;  %v393_v51 = vcombine.low %v389_v48, %v390_v49 }
  0xa4   : > { %379 = vst.msk [vmem:[#allocation2 + $0x3] ss:$8 sm:$0x3] %vm1355_vm0, %v376_v50  ;;  %v400_v52 = vrot.slane %v393_v51, %v1395_v20  ;;  %v415_v53 = vpop.permute.xlu1 %414  ;;  %v413_v54 = vpop.permute.xlu0 %412 }
  0xa5   : > { %v417_v55 = vsel %vm416_vm6, %v413_v54, %v415_v53  ;;  %v418_v56 = vsel %vm416_vm6, %v415_v53, %v413_v54 }
  0xa6   : > { %v407_v57 = vrot.slane %v400_v52, %v1395_v20  ;;  %v421_v58 = vcombine.low %v417_v55, %v418_v56 }
  0xa8   : > { %410 = vst.msk [vmem:[#allocation2 + $0x5] ss:$8 sm:$0x3] %vm1355_vm0, %v407_v57  ;;  %v428_v59 = vrot.slane %v421_v58, %v1395_v20  ;;  %v443_v60 = vpop.permute.xlu1 %442  ;;  %v441_v61 = vpop.permute.xlu0 %440  ;;  %v641_v57 = vld [vmem:[%s1659_s4] sm:$0xff]  ;;  %v642_v58 = vld [vmem:[%s1659_s4 + $0x8] sm:$0x1] }
  0xa9   : > { %v445_v62 = vsel %vm444_vm7, %v441_v61, %v443_v60  ;;  %v446_v63 = vsel %vm444_vm7, %v443_v60, %v441_v61 }
  0xaa   : > { %v435_v0 = vrot.slane %v428_v59, %v1395_v20  ;;  %v449_v1 = vcombine.low %v445_v62, %v446_v63 }
  0xac   : > { %438 = vst.msk [vmem:[#allocation2 + $0x6] ss:$8 sm:$0x3] %vm1355_vm0, %v435_v0  ;;  %v456_v2 = vrot.slane %v449_v1, %v1395_v20  ;;  %v471_v3 = vpop.permute.xlu1 %470  ;;  %v469_v4 = vpop.permute.xlu0 %468 }
  0xad   : > { %v473_v6 = vsel %vm472_vm8, %v469_v4, %v471_v3  ;;  %v474_v7 = vsel %vm472_vm8, %v471_v3, %v469_v4 }
  0xae   : > { %v463_v9 = vrot.slane %v456_v2, %v1395_v20  ;;  %v477_v10 = vcombine.low %v473_v6, %v474_v7 }
  0xb0   : > { %466 = vst.msk [vmem:[#allocation2 + $0x7] ss:$8 sm:$0x3] %vm1355_vm0, %v463_v9  ;;  %v484_v11 = vrot.slane %v477_v10, %v1395_v20 }
  0xb2   : > { %v491_v12 = vrot.slane %v484_v11, %v1395_v20 }
  0xb4   : > { %494 = vst.msk [vmem:[#allocation2 + $0x10] ss:$8 sm:$0x3] %vm1355_vm0, %v491_v12 }
  0xb7   : > { %v497_v17 = vld [vmem:[#allocation2 + $0x8] sm:$0xff]  ;;  %v496_v19 = vld [vmem:[#allocation2] sm:$0xff] }
  0xb8   : > { %v501_v23 = vmul.f32 %v497_v17, %v1470_v13  ;;  %v500_v25 = vmul.f32 %v496_v19, %v1480_v15 }
  0xbb   : > { %v499_v21 = vld [vmem:[#allocation2 + $0x18] sm:$0x1]  ;;  %v498_v22 = vld [vmem:[#allocation2 + $0x10] sm:$0x1] }
  0xbc   : > { %v503_v24 = vmul.f32 %v499_v21, %v1475_v14  ;;  %v502_v26 = vmul.f32 %v498_v22, %v1485_v18 }
  0xbd   : > { %v515_v35 = vpop.permute.xlu0 %514  ;;  %v520_v36 = vpop.permute.xlu1 %519 }
  0xbe   : > { %v1120_v27 = vpack.c.bf16 %v503_v24, %v501_v23  ;;  %v1123_v28 = vpack.c.bf16 %v502_v26, %v500_v25 }
  0xc0   : > { %1122 = vmatprep.subr.msk.bf16.mxu0 %vm1121_vm11, %v1120_v27 }
  0xc1   : > { %1125 = vmatpush1.bf16.msk.msra.mxu0 %vm1121_vm11, %v1123_v28  ;;  %v525_v47 = vpop.permute.xlu1 %524  ;;  %v530_v48 = vpop.permute.xlu0 %529 }
  0xc4   : > { %1108 = vmatmul.mubr.msk.f32.vlgmr.msra.gmra.mrb[0].mxu0 %vm532_vm12, %v504_v29 }
  0xc5   : > { %622 = vmatprep.mubr.f32.mxu0 %v1259_v8 }
  0xc8   : > { %1109 = vmatmul.mubr.msk.f32.gmra.mrb[2].mxu0 %vm532_vm12, %v505_v30 }
  0xc9   : > { %628 = vmatprep.mubr.f32.mxu0 %v1259_v8 }
  0xcc   : > { %1110 = vmatmul.mubr.msk.f32.gmra.mrb[4].mxu0 %vm532_vm12, %v506_v31 }
  0xcd   : > { %634 = vmatprep.mubr.f32.mxu0 %v1259_v8 }
  0xd0   : > { %1111 = vmatmul.mubr.msk.f32.gmra.mrb[6].mxu0 %vm532_vm12, %v507_v32 }
 0x197   : > { %v618_v33 = vpop.f32.mrb[0].mxu0 }
 0x198   : > { %v620_v34 = vpop.f32.mrb[1].mxu0  ;;  %v619_v38 = vadd.f32 %v618_v33, %v515_v35 }
 0x199   : > { %v621_v41 = vadd.f32 %v620_v34, %v515_v35 }
 0x19b   : > { %v624_v37 = vpop.f32.mrb[2].mxu0 }
 0x19c   : > { %v625_v39 = vadd.f32 %v624_v37, %v520_v36  ;;  %v626_v40 = vpop.f32.mrb[3].mxu0 }
 0x19d   : > { %v627_v42 = vadd.f32 %v626_v40, %v520_v36 }
 0x19e   : > { %v1128_v43 = vpack.c.bf16 %v625_v39, %v619_v38 }
 0x19f   : > { %v630_v44 = vpop.f32.mrb[4].mxu0  ;;  %v1126_v45 = vpack.c.bf16 %v627_v42, %v621_v41 }
 0x1a0   : > { %v632_v46 = vpop.f32.mrb[5].mxu0  ;;  %v631_v50 = vadd.f32 %v630_v44, %v525_v47 }
 0x1a1   : > { %1127 = vmatprep.subr.bf16.mxu1 %v1126_v45  ;;  %v633_v53 = vadd.f32 %v632_v46, %v525_v47 }
 0x1a2   : > { %1129 = vmatpush1.bf16.msra.mxu1 %v1128_v43 }
 0x1a3   : > { %v636_v49 = vpop.f32.mrb[6].mxu0 }
 0x1a4   : > { %v637_v51 = vadd.f32 %v636_v49, %v530_v48  ;;  %v638_v52 = vpop.f32.mrb[7].mxu0 }
 0x1a5   : > { %v639_v54 = vadd.f32 %v638_v52, %v530_v48 }
 0x1a6   : > { %v1132_v55 = vpack.c.bf16 %v637_v51, %v631_v50 }
 0x1a7   : > { %v1130_v56 = vpack.c.bf16 %v639_v54, %v633_v53 }
 0x1a9   : > { %1131 = vmatprep.subr.bf16.mxu1 %v1130_v56 }
 0x1aa   : > { %1133 = vmatpush1.bf16.msra.mxu1 %v1132_v55 }
 0x1ad   : > { %1112 = vmatmul.mubr.msk.f32.vlgmr.msra.gmra.mrb[0].mxu1 %vm643_vm13, %v641_v57 }
 0x1ae   : > { %720 = vmatprep.mubr.f32.mxu1 %v1259_v8 }
 0x1b1   : > { %1113 = vmatmul.mubr.msk.f32.gmra.mrb[2].mxu1 %vm643_vm13, %v642_v58 }
 0x280   : > { %v716_v59 = vpop.f32.mrb[0].mxu1 }
 0x281   : > { %727 = vrot.lane.b32.xlu1 %v716_v59, %s1252_s16  ;;  %v718_v60 = vpop.f32.mrb[1].mxu1  ;;  %v755_v62 = vrot.slane %v716_v59, 1  ;;  %v785_v3 = vrot.slane %v716_v59, 2  ;;  %v815_v6 = vrot.slane %v716_v59, 3  ;;  %v863_v9 = vrot.slane %v716_v59, 5 }
 0x282   : > { %v845_v61 = vcombine.high %v716_v59, %v718_v60  ;;  %729 = vrot.lane.b32.xlu0 %v718_v60, %s1252_s16  ;;  %v756_v0 = vrot.slane %v718_v60, 1  ;;  %v786_v4 = vrot.slane %v718_v60, 2  ;;  %v816_v7 = vrot.slane %v718_v60, 3  ;;  %s241_s16 = sand.u32 1, %s1241_s24  }
 0x283   : > { %v864_v10 = vrot.slane %v718_v60, 5  ;;  %v893_v11 = vrot.slane %v716_v59, 6  ;;  %v894_v12 = vrot.slane %v718_v60, 6  ;;  %v923_v17 = vrot.slane %v716_v59, 7 }
 0x284   : > { %v852_v63 = vrot.slane %v845_v61, %v1395_v20  ;;  %v722_v1 = vpop.f32.mrb[2].mxu1  ;;  %v924_v19 = vrot.slane %v718_v60, 7 }
 0x285   : > { %759 = vrot.lane.b32.xlu1 %v755_v62, %s1251_s15  ;;  %v724_v8 = vpop.f32.mrb[3].mxu1 }
 0x286   : > { %v859_v2 = vrot.slane %v852_v63, %v1395_v20  ;;  %761 = vrot.lane.b32.xlu0 %v756_v0, %s1251_s15  ;;  %s1003_s15 = sld [smem:[#allocation3]] }
 0x288   : > { %861 = vst.msk [vmem:[#allocation2 + $0x4] ss:$8 sm:$0x3] %vm1355_vm0, %v859_v2 }
 0x289   : > { %789 = vrot.lane.b32.xlu1 %v785_v3, %s1253_s17 }
 0x28a   : > { %791 = vrot.lane.b32.xlu0 %v786_v4, %s1253_s17  ;;  %s1104_s17 = sshll.u32 %s241_s16, 1 }
 0x28d   : > { %819 = vrot.lane.b32.xlu1 %v815_v6, %s1254_s18 }
 0x28e   : > { %821 = vrot.lane.b32.xlu0 %v816_v7, %s1254_s18  ;;  %s1119_s18 = sshll.u32 %s1323_s5, 5  ;;  %s1027_s5 = scalar_lea.sflag [#allocation5], %s241_s16 }
 0x28f   : > { %s1611_s11 = scalar_lea.hbm %s1661_s6, %s1119_s18 }
 0x291   : > { %867 = vrot.lane.b32.xlu1 %v863_v9, %s1255_s19 }
 0x292   : > { %869 = vrot.lane.b32.xlu0 %v864_v10, %s1255_s19  ;;  %s243_s19 = scalar_lea.vmem [#allocation4], %s1104_s17 }
 0x295   : > { %897 = vrot.lane.b32.xlu1 %v893_v11, %s1256_s20 }
 0x296   : > { %899 = vrot.lane.b32.xlu0 %v894_v12, %s1256_s20  ;;  %s1041_s20 = sshll.u32 %s243_s19, 4  ;;  %s1613_s20 = int_to_ptr.vmem [resolvable:$true] %s1041_s20 }
 0x297   : > { %s1187_s12 = scalar_lea.vmem %s1613_s20, 32  ;;  %p1194_p0 = scmp.lt.s32.totalorder %s1613_s20, %s1192_s14 }
 0x298   : > { %p1188_p11 = scmp.ne.s32.totalorder %s1613_s20, %s1187_s12  ;;  %p1195_p1 = scmp.lt.s32.totalorder %s1193_s27, %s1187_s12 }
 0x299   : > { %953 = vrot.lane.b32.xlu1 %v722_v1, %s1258_s22 }
 0x29a   : > { %955 = vrot.lane.b32.xlu0 %v724_v8, %s1258_s22  ;;  %p1189_p12 = pnand %p1188_p11, %p1340_p5  ;;  %p1196_p2 = por %p1195_p1, %p1194_p0 }
 0x29c   : > { %p1190_p13 = pneg %p1189_p12 }
 0x29d   : > { %927 = vrot.lane.b32.xlu1 %v923_v17, %s1257_s21 }
 0x29e   : > { %929 = vrot.lane.b32.xlu0 %v924_v19, %s1257_s21  ;;  %p1197_p3 = pnand %p1196_p2, %p1190_p13 }
 0x2f3   : > { %v728_v21 = vpop.permute.xlu1 %727 }
 0x2f4   : > { %v730_v22 = vpop.permute.xlu0 %729 }
 0x2f5   : > { %v731_v23 = vsel %vm270_vm2, %v728_v21, %v730_v22  ;;  %v732_v24 = vsel %vm270_vm2, %v730_v22, %v728_v21 }
 0x2f6   : > { %v735_v25 = vcombine.low %v732_v24, %v731_v23 }
 0x2f7   : > { %v760_v26 = vpop.permute.xlu1 %759 }
 0x2f8   : > { %v742_v27 = vrot.slane %v735_v25, %v1395_v20  ;;  %v762_v28 = vpop.permute.xlu0 %761 }
 0x2f9   : > { %v763_v29 = vsel %vm301_vm1, %v760_v26, %v762_v28  ;;  %v764_v30 = vsel %vm301_vm1, %v762_v28, %v760_v26 }
 0x2fa   : > { %v749_v31 = vrot.slane %v742_v27, %v1395_v20  ;;  %v767_v32 = vcombine.low %v764_v30, %v763_v29 }
 0x2fb   : > { %v790_v33 = vpop.permute.xlu1 %789 }
 0x2fc   : > { %751 = vst.msk [vmem:[#allocation2] ss:$8 sm:$0x3] %vm1355_vm0, %v749_v31  ;;  %v774_v34 = vrot.slane %v767_v32, %v1395_v20  ;;  %v792_v35 = vpop.permute.xlu0 %791 }
 0x2fd   : > { %v793_v36 = vsel %vm329_vm3, %v790_v33, %v792_v35  ;;  %v794_v37 = vsel %vm329_vm3, %v792_v35, %v790_v33 }
 0x2fe   : > { %v781_v38 = vrot.slane %v774_v34, %v1395_v20  ;;  %v797_v39 = vcombine.low %v794_v37, %v793_v36 }
 0x2ff   : > { %v820_v40 = vpop.permute.xlu1 %819 }
 0x300   : > { %783 = vst.msk [vmem:[#allocation2 + $0x1] ss:$8 sm:$0x3] %vm1355_vm0, %v781_v38  ;;  %v804_v41 = vrot.slane %v797_v39, %v1395_v20  ;;  %v822_v42 = vpop.permute.xlu0 %821 }
 0x301   : > { %v823_v43 = vsel %vm357_vm4, %v820_v40, %v822_v42  ;;  %v824_v44 = vsel %vm357_vm4, %v822_v42, %v820_v40 }
 0x302   : > { %v811_v45 = vrot.slane %v804_v41, %v1395_v20  ;;  %v827_v46 = vcombine.low %v824_v44, %v823_v43 }
 0x303   : > { %v868_v47 = vpop.permute.xlu1 %867 }
 0x304   : > { %813 = vst.msk [vmem:[#allocation2 + $0x2] ss:$8 sm:$0x3] %vm1355_vm0, %v811_v45  ;;  %v834_v48 = vrot.slane %v827_v46, %v1395_v20  ;;  %v870_v49 = vpop.permute.xlu0 %869 }
 0x305   : > { %v871_v50 = vsel %vm388_vm5, %v868_v47, %v870_v49  ;;  %v872_v51 = vsel %vm388_vm5, %v870_v49, %v868_v47 }
 0x306   : > { %v841_v52 = vrot.slane %v834_v48, %v1395_v20  ;;  %v875_v53 = vcombine.low %v871_v50, %v872_v51 }
 0x307   : > { %v898_v54 = vpop.permute.xlu1 %897 }
 0x308   : > { %843 = vst.msk [vmem:[#allocation2 + $0x3] ss:$8 sm:$0x3] %vm1355_vm0, %v841_v52  ;;  %v882_v55 = vrot.slane %v875_v53, %v1395_v20  ;;  %v900_v56 = vpop.permute.xlu0 %899 }
 0x309   : > { %v901_v57 = vsel %vm416_vm6, %v898_v54, %v900_v56  ;;  %v902_v58 = vsel %vm416_vm6, %v900_v56, %v898_v54 }
 0x30a   : > { %v889_v59 = vrot.slane %v882_v55, %v1395_v20  ;;  %v905_v60 = vcombine.low %v901_v57, %v902_v58 }
 0x30b   : > { %v954_v61 = vpop.permute.xlu1 %953 }
 0x30c   : > { %891 = vst.msk [vmem:[#allocation2 + $0x5] ss:$8 sm:$0x3] %vm1355_vm0, %v889_v59  ;;  %v912_v62 = vrot.slane %v905_v60, %v1395_v20  ;;  %v956_v63 = vpop.permute.xlu0 %955 }
 0x30d   : > { %v957_v0 = vsel %vm472_vm8, %v954_v61, %v956_v63  ;;  %v958_v1 = vsel %vm472_vm8, %v956_v63, %v954_v61 }
 0x30e   : > { %v919_v8 = vrot.slane %v912_v62, %v1395_v20  ;;  %v961_v2 = vcombine.low %v957_v0, %v958_v1 }
 0x30f   : > { %v928_v3 = vpop.permute.xlu1 %927 }
 0x310   : > { %921 = vst.msk [vmem:[#allocation2 + $0x6] ss:$8 sm:$0x3] %vm1355_vm0, %v919_v8  ;;  %v968_v4 = vrot.slane %v961_v2, %v1395_v20  ;;  %v930_v6 = vpop.permute.xlu0 %929 }
 0x311   : > { %v931_v7 = vsel %vm444_vm7, %v928_v3, %v930_v6  ;;  %v932_v9 = vsel %vm444_vm7, %v930_v6, %v928_v3 }
 0x312   : > { %v975_v10 = vrot.slane %v968_v4, %v1395_v20  ;;  %v935_v11 = vcombine.low %v931_v7, %v932_v9 }
 0x314   : > { %977 = vst.msk [vmem:[#allocation2 + $0x10] ss:$8 sm:$0x3] %vm1355_vm0, %v975_v10  ;;  %v942_v12 = vrot.slane %v935_v11, %v1395_v20 }
 0x316   : > { %v949_v17 = vrot.slane %v942_v12, %v1395_v20 }
 0x318   : > { %951 = vst.msk [vmem:[#allocation2 + $0x7] ss:$8 sm:$0x3] %vm1355_vm0, %v949_v17 }
 0x31b   : > { %v981_v19 = vld [vmem:[#allocation2 + $0x10] sm:$0x1]  ;;  %v982_v21 = vld [vmem:[#allocation2 + $0x18] sm:$0x1] }
 0x31c   : > { %v985_v22 = vmul.f32 %v981_v19, %v1485_v18  ;;  %v986_v16 = vmul.f32 %v982_v21, %v1475_v14 }
 0x31e   : > { %v987_v27 = vsel %vm545_vm9, %v985_v22, 0.0  ;;  %v995_v28 = vsel %vm545_vm9, %v986_v16, 0.0 }
 0x31f   : > { %v979_v23 = vld [vmem:[#allocation2] sm:$0xff]  ;;  %v980_v24 = vld [vmem:[#allocation2 + $0x8] sm:$0xff] }
 0x320   : > { %v983_v25 = vmul.f32 %v979_v23, %v1480_v15  ;;  %v984_v26 = vmul.f32 %v980_v24, %v1470_v13  ;;  %v1004_v13 = vstv %s1003_s15 }
 0x322   : > { %v988_v29 = vadd.f32 %v987_v27, %v983_v25  ;;  %v996_v30 = vadd.f32 %v995_v28, %v984_v26 }
 0x324   : > { %v989_v31 = vrot.slane %v988_v29, 4  ;;  %v997_v32 = vrot.slane %v996_v30, 4 }
 0x326   : > { %v990_v33 = vadd.f32 %v989_v31, %v988_v29  ;;  %v998_v18 = vadd.f32 %v997_v32, %v996_v30 }
 0x328   : > { %v991_v14 = vrot.slane %v990_v33, 2  ;;  %v999_v34 = vrot.slane %v998_v18, 2 }
 0x32a   : > { %v992_v35 = vadd.f32 %v991_v14, %v990_v33  ;;  %v1000_v36 = vadd.f32 %v999_v34, %v998_v18 }
 0x32c   : > { %v993_v15 = vrot.slane %v992_v35, 1  ;;  %v1001_v37 = vrot.slane %v1000_v36, 1 }
 0x32e   : > { %v994_v38 = vadd.f32 %v993_v15, %v992_v35  ;;  %v1002_v39 = vadd.f32 %v1001_v37, %v1000_v36 }
 0x330   : > { %v1005_v40 = vadd.f32 %v1004_v13, %v994_v38  ;;  %v1006_v41 = vadd.f32 %v1004_v13, %v1002_v39 }
 0x332   : > { %v1009_v42 = vcombine.low %v1005_v40, %v1006_v41 }
 0x334   : > { %v1016_v43 = vrot.slane %v1009_v42, %v1395_v20 }
 0x336   : > { %v1023_v44 = vrot.slane %v1016_v43, %v1395_v20 }
 0x338   : > { %1025 = vst.msk [vmem:[%s243_s19] sm:$0x3] %vm1355_vm0, %v1023_v44 }
 0x339   : > { %1200 = shalt.err (!%p1197_p3)
}
 0x33a   : > { %s1201_s29 = scalar_lea.hbm %s1611_s11, 32  ;;  %s1205_s15 = scalar_lea.hbm %s1661_s6, 64 }
 0x33b   : > { %p1202_p4 = scmp.ne.s32.totalorder %s1611_s11, %s1201_s29  ;;  %p1206_p9 = scmp.lt.u32.totalorder %s1611_s11, %s1661_s6 }
 0x33c   : > { %p1207_p10 = scmp.lt.u32.totalorder %s1205_s15, %s1201_s29  ;;  %p1209_p12 = scmp.lt.u32.totalorder %s1201_s29, %s1611_s11 }
 0x33d   : > { %p1203_p7 = pnand %p1202_p4, %p1340_p5 }
 0x33e   : > { %p1208_p11 = por %p1207_p10, %p1206_p9 }
 0x33f   : > { %p1204_p8 = pneg %p1203_p7 }
 0x340   : > { %p1210_p13 = por %p1209_p12, %p1208_p11 }
 0x342   : > { %p1211_p0 = pnand %p1210_p13, %p1204_p8 }
 0x344   : > { %1214 = shalt.err (!%p1211_p0)
}
 0x345   : > { %1134 = dma.vmem_to_hbm [thread:$0]  (%p1340_p5), %s1613_s20, 32, %s1611_s11, %s1027_s5  }
 0x346 PF: > { %p1140_p1 = scmp.ge.s32.totalorder %s1249_s26, 2  ;;  %s1053_s18 = sand.u32 1, %s1237_s23  }
 0x347   : > { %s1054_s19 = scalar_lea.sflag [#allocation5], %s1053_s18 }
 0x348   : > { %p1137_p2 = pnand %p1140_p1, %p1344_p6 }
 0x34a   : > { %1232 = dma.done.wait (!%p1137_p2), %s1054_s19, 32  }
 0x34b   : > { %1234 = vsyncadd (!%p1137_p2), %s1054_s19, 4294967264  ;;  %p17_p3 = scmp.ge.s32.totalorder %s1327_s28, 4   ;;  %s1666_s23 = smov %s1241_s24 }
 0x34c   : > { %s1667_s24 = smov %s1245_s25  ;;  %s1668_s25 = smov %s1338_s7 }
 0x34d   : > { %s1669_s26 = smov %s1327_s28  ;;  %19 = sbr.rel (!%p17_p3) target bundleno = 5 (0x5), region = 87 }
 0x354   :  { %1059 = vsyncpa [#allocation5], 1 }
 0x355   :  { %1061 = vsyncpa [#allocation5 + $0x1], 1 }

</bundles_post_ra>
